<compile_context>
chip_gen: v7x
topology: tpu7x:2x2x1
jax: 0.10.0
libtpu: 0.0.40
codegen_flags: <defaults>
</compile_context>

<pallas_src>
import jax
import jax.numpy as jnp
from jax.experimental import pallas as pl
from jax.experimental.pallas import tpu as pltpu


def _hard_sigmoid_kernel(x_ref, o_ref):
    x = x_ref[...].astype(jnp.float32)
    # relu6(x + 3) / 6 == clip(x + 3, 0, 6) / 6
    y = jnp.clip(x + 3.0, 0.0, 6.0) * (1.0 / 6.0)
    o_ref[...] = y.astype(o_ref.dtype)


def _round_up(a, m):
    return ((a + m - 1) // m) * m


def hard_sigmoid_pallas(x, *, target_block_bytes=2 * 1024 * 1024):
    orig_shape = x.shape
    orig_dtype = x.dtype
    n = x.size
    if n == 0:
        return x

    flat = x.reshape(-1)
    itemsize = jnp.dtype(orig_dtype).itemsize
    # Sublane packing multiple: 8 rows for 32-bit, 16 for 16-bit, 32 for 8-bit.
    sub = {4: 8, 2: 16, 1: 32}.get(itemsize, 8)

    # Widest lane dim (multiple of 128) that divides n -> unmasked full-width
    # stores, fewer/larger DMA descriptors, and no pad copy.
    lane = 128
    for cand in (1024, 512, 256, 128):
        if n % cand == 0:
            lane = cand
            break

    if n % lane == 0:
        n_rows = n // lane
        x2d = flat.reshape(n_rows, lane)
        padded = False
    else:
        # Rare path (N not a multiple of 128): pad to whole lanes.
        n_rows = pl.cdiv(n, lane)
        x2d = jnp.pad(flat, (0, n_rows * lane - n)).reshape(n_rows, lane)
        padded = True

    # ~2 MiB blocks, rounded to the packed-sublane multiple.
    block_rows = max(sub, (target_block_bytes // (lane * itemsize)) // sub * sub)
    # Don't allocate a block larger than the (rounded-up) array.
    block_rows = min(block_rows, _round_up(n_rows, sub))
    # Keep >= 2 parallel grid steps on large inputs so both v7x TCs are used.
    if n_rows <= block_rows and n_rows * lane * itemsize > (1 << 20):
        block_rows = max(sub, _round_up(pl.cdiv(n_rows, 2), sub))

    grid = (pl.cdiv(n_rows, block_rows),)

    out2d = pl.pallas_call(
        _hard_sigmoid_kernel,
        out_shape=jax.ShapeDtypeStruct((n_rows, lane), orig_dtype),
        grid_spec=pltpu.PrefetchScalarGridSpec(
            num_scalar_prefetch=0,
            grid=grid,
            in_specs=[pl.BlockSpec((block_rows, lane), lambda i: (i, 0))],
            out_specs=pl.BlockSpec((block_rows, lane), lambda i: (i, 0)),
        ),
        compiler_params=pltpu.CompilerParams(
            dimension_semantics=("parallel",)),
    )(x2d)

    if padded:
        return out2d.reshape(-1)[:n].reshape(orig_shape)
    return out2d.reshape(orig_shape)


def hard_sigmoid_ref(x):
    xf = x.astype(jnp.float32)
    return (jnp.clip(xf + 3.0, 0.0, 6.0) / 6.0).astype(x.dtype)


if __name__ == "__main__":
    key = jax.random.PRNGKey(0)
    k0, k1, k2, k3 = jax.random.split(key, 4)

    # Primary (matches the PyTorch module usage): small NCHW f32 input.
    x = jax.random.normal(k0, (2, 4, 16, 16), dtype=jnp.float32) * 4.0
    out = hard_sigmoid_pallas(x)
    jax.block_until_ready(out)
    ref = hard_sigmoid_ref(x)
    assert out.shape == x.shape and out.dtype == x.dtype
    assert jnp.allclose(out, ref, atol=1e-6, rtol=1e-6)

    # Multi-block grid path (f32, several ~2 MiB blocks).
    xb = jax.random.normal(k1, (8, 16, 64, 64), dtype=jnp.float32) * 4.0
    outb = hard_sigmoid_pallas(xb)
    jax.block_until_ready(outb)
    assert jnp.allclose(outb, hard_sigmoid_ref(xb), atol=1e-6, rtol=1e-6)

    # bf16 path (16-row sublane packing, f32 compute in-kernel).
    xh = (jax.random.normal(k2, (2, 8, 40, 40), dtype=jnp.float32) * 4.0
          ).astype(jnp.bfloat16)
    outh = hard_sigmoid_pallas(xh)
    jax.block_until_ready(outh)
    assert outh.dtype == jnp.bfloat16
    assert jnp.allclose(outh.astype(jnp.float32),
                        hard_sigmoid_ref(xh).astype(jnp.float32),
                        atol=8e-3, rtol=8e-3)

    # Ragged size (N not a multiple of 128) -> pad fallback path.
    xr = jax.random.normal(k3, (3, 5, 7, 11), dtype=jnp.float32) * 4.0
    outr = hard_sigmoid_pallas(xr)
    jax.block_until_ready(outr)
    assert outr.shape == xr.shape
    assert jnp.allclose(outr, hard_sigmoid_ref(xr), atol=1e-6, rtol=1e-6)

    print("KERNEL_OK")
</pallas_src>

<mosaic_0001>
module attributes {stable_mosaic.version = 11 : i64} {
  func.func @_hard_sigmoid_kernel(%arg0: i32, %arg1: memref<8x1024xf32, #tpu.memory_space<vmem>>, %arg2: memref<8x1024xf32, #tpu.memory_space<vmem>>) attributes {dimension_semantics = [#tpu.dimension_semantics<parallel>], iteration_bounds = array<i64: 1>, scalar_prefetch = 0 : i64, scratch_operands = 0 : i64, tpu.core_type = #tpu.core_type<tc>, window_params = [{transform_indices = @transform_0, window_bounds = array<i64: 8, 1024>}, {transform_indices = @transform_1, window_bounds = array<i64: 8, 1024>}]} {
    %c0 = arith.constant 0 : index
    %c0_0 = arith.constant 0 : index
    %0 = vector.load %arg1[%c0, %c0_0] : memref<8x1024xf32, #tpu.memory_space<vmem>>, vector<8x1024xf32>
    %cst = arith.constant 3.000000e+00 : f32
    %1 = vector.broadcast %cst : f32 to vector<8x1024xf32>
    %2 = arith.addf %0, %1 : vector<8x1024xf32>
    %cst_1 = arith.constant 0.000000e+00 : f32
    %cst_2 = arith.constant 6.000000e+00 : f32
    %3 = vector.broadcast %cst_1 : f32 to vector<8x1024xf32>
    %4 = arith.maximumf %3, %2 : vector<8x1024xf32>
    %5 = vector.broadcast %cst_2 : f32 to vector<8x1024xf32>
    %6 = arith.minimumf %5, %4 : vector<8x1024xf32>
    %cst_3 = arith.constant 0.166666672 : f32
    %7 = vector.broadcast %cst_3 : f32 to vector<8x1024xf32>
    %8 = arith.mulf %6, %7 : vector<8x1024xf32>
    %c0_4 = arith.constant 0 : index
    %c0_5 = arith.constant 0 : index
    %9 = vector.load %arg2[%c0_4, %c0_5] : memref<8x1024xf32, #tpu.memory_space<vmem>>, vector<8x1024xf32>
    tpu.vector_store %arg2[%c0_4, %c0_5], %8 {strides = array<i32>} : memref<8x1024xf32, #tpu.memory_space<vmem>>, vector<8x1024xf32>,
    return
  }
  func.func @transform_0(%arg0: i32) -> (i32, i32) {
    %c0_i32 = arith.constant 0 : i32
    %c0_i32_0 = arith.constant 0 : i32
    return %arg0, %c0_i32 : i32, i32
  }
  func.func @transform_1(%arg0: i32) -> (i32, i32) {
    %c0_i32 = arith.constant 0 : i32
    %c0_i32_0 = arith.constant 0 : i32
    return %arg0, %c0_i32 : i32, i32
  }
}

</mosaic_0001>

<bundles_post_ra>
// kernel: tpu_custom_call.1
= control target key start
LH: loop header
LB: loop body
LE: loop exit
PB: predicated region body
PF: predicated region fallthrough
CT: control target
= control target key end

     0   :  { %6 = vsyncpa [#allocation3], 0  ;;  %s184_s0 = inlined_call_operand.hbm [shape: f32[2,1024], index: 0, kind: input, shape index: {}]   ;;  %s185_s1 = inlined_call_operand.hbm [shape: f32[2,1024], index: 1, kind: output, shape index: {}]  }
   0x1   :  { %7 = vsyncpa [#allocation4], 0 }
   0x2   :  { %12 = vsyncadd [#allocation3], 768  ;;  %s140_s6 = smov [#allocation2]   ;;  %s92_s10 = scalar_lea.hbm %s184_s0, 256 }
   0x3   :  { %s13_s7 = sshll.u32 %s140_s6, 4  ;;  %p93_p0 = scmp.ne.s32.totalorder %s184_s0, %s92_s10  ;;  %s14_s7 = int_to_ptr.vmem [resolvable:$true] %s13_s7 }
   0x4   :  { %p96_p1 = scmp.lt.u32.totalorder %s92_s10, %s184_s0 }
   0x6   :  { %p98_p2 = pnand %p96_p1, %p93_p0 }
   0x8   :  { %101 = shalt.err (!%p98_p2)
}
   0x9   :  { %s102_s15 = scalar_lea.vmem %s14_s7, 256  ;;  %s106_s16 = scalar_lea.vmem %s14_s7, 1024 }
   0xa   :  { %p103_p3 = scmp.ne.s32.totalorder %s14_s7, %s102_s15  ;;  %p107_p4 = scmp.lt.s32.totalorder %s14_s7, %s14_s7 }
   0xb   :  { %p108_p5 = scmp.lt.s32.totalorder %s106_s16, %s102_s15 }
   0xd   :  { %p109_p6 = por %p108_p5, %p107_p4 }
   0xf   :  { %p110_p7 = pnand %p109_p6, %p103_p3 }
  0x11   :  { %113 = shalt.err (!%p110_p7)
}
  0x12   :  { %s141_s17 = smov 256   ;;  %s142_s18 = smov 16  }
  0x13   :  { %19 = dma.hbm_to_vmem [thread:$0]  %s184_s0, 256, %s14_s7, [#allocation3], %s141_s17, %s141_s17, %s142_s18  }
  0x14   :  { %136 = dma.done.wait [#allocation3], 1024  }
  0x15   :  { %137 = vsyncadd [#allocation3], 4294966272  ;;  %v23_v0 = vld [vmem:[#allocation2] sm:$0xff]  ;;  %v24_v1 = vld [vmem:[#allocation2 + $0x8] sm:$0xff] }
  0x16   :  { %v25_v2 = vld [vmem:[#allocation2 + $0x10] sm:$0xff]  ;;  %v31_v3 = vadd.f32 3.0, %v23_v0  ;;  %v32_v4 = vadd.f32 3.0, %v24_v1  ;;  %v26_v6 = vld [vmem:[#allocation2 + $0x18] sm:$0xff]  ;;  %v27_v7 = vld [vmem:[#allocation2 + $0x20] sm:$0xff] }
  0x17   :  { %v33_v5 = vadd.f32 3.0, %v25_v2  ;;  %v28_v8 = vld [vmem:[#allocation2 + $0x28] sm:$0xff]  ;;  %v34_v9 = vadd.f32 3.0, %v26_v6  ;;  %v35_v10 = vadd.f32 3.0, %v27_v7  ;;  %v29_v12 = vld [vmem:[#allocation2 + $0x30] sm:$0xff]  ;;  %v30_v13 = vld [vmem:[#allocation2 + $0x38] sm:$0xff] }
  0x18   :  { %v36_v11 = vadd.f32 3.0, %v28_v8  ;;  %v39_v14 = vmax.f32 %v31_v3, 0.0  ;;  %v40_v15 = vmax.f32 %v32_v4, 0.0  ;;  %v37_v17 = vadd.f32 3.0, %v29_v12 }
  0x19   :  { %v41_v16 = vmax.f32 %v33_v5, 0.0  ;;  %v42_v18 = vmax.f32 %v34_v9, 0.0  ;;  %v43_v19 = vmax.f32 %v35_v10, 0.0  ;;  %v38_v21 = vadd.f32 3.0, %v30_v13 }
  0x1a   :  { %v44_v20 = vmax.f32 %v36_v11, 0.0  ;;  %v47_v22 = vmin.f32 %v39_v14, 6.0  ;;  %v48_v23 = vmin.f32 %v40_v15, 6.0  ;;  %v45_v25 = vmax.f32 %v37_v17, 0.0 }
  0x1b   :  { %v49_v24 = vmin.f32 %v41_v16, 6.0  ;;  %v50_v26 = vmin.f32 %v42_v18, 6.0  ;;  %v51_v27 = vmin.f32 %v43_v19, 6.0  ;;  %v46_v29 = vmax.f32 %v38_v21, 0.0 }
  0x1c   :  { %v52_v28 = vmin.f32 %v44_v20, 6.0  ;;  %v55_v30 = vmul.f32 0.16666667, %v47_v22  ;;  %v56_v31 = vmul.f32 0.16666667, %v48_v23  ;;  %v53_v36 = vmin.f32 %v45_v25, 6.0 }
  0x1d   :  { %v57_v32 = vmul.f32 0.16666667, %v49_v24  ;;  %v58_v33 = vmul.f32 0.16666667, %v50_v26  ;;  %v59_v34 = vmul.f32 0.16666667, %v51_v27 }
  0x1e   :  { %v60_v35 = vmul.f32 0.16666667, %v52_v28  ;;  %63 = vst [vmem:[#allocation5] sm:$0xff] %v55_v30  ;;  %64 = vst [vmem:[#allocation5 + $0x8] sm:$0xff] %v56_v31  ;;  %v54_v37 = vmin.f32 %v46_v29, 6.0 }
  0x1f   :  { %65 = vst [vmem:[#allocation5 + $0x10] sm:$0xff] %v57_v32  ;;  %66 = vst [vmem:[#allocation5 + $0x18] sm:$0xff] %v58_v33  ;;  %v61_v38 = vmul.f32 0.16666667, %v53_v36 }
  0x20   :  { %67 = vst [vmem:[#allocation5 + $0x20] sm:$0xff] %v59_v34  ;;  %68 = vst [vmem:[#allocation5 + $0x28] sm:$0xff] %v60_v35  ;;  %v62_v39 = vmul.f32 0.16666667, %v54_v37 }
  0x21   :  { %69 = vst [vmem:[#allocation5 + $0x30] sm:$0xff] %v61_v38 }
  0x22   :  { %70 = vst [vmem:[#allocation5 + $0x38] sm:$0xff] %v62_v39 }
  0x23   :  { %75 = vsyncadd [#allocation4], 768  ;;  %s143_s0 = smov [#allocation5]  }
  0x24   :  { %s76_s21 = sshll.u32 %s143_s0, 4  ;;  %s77_s21 = int_to_ptr.vmem [resolvable:$true] %s76_s21 }
  0x25   :  { %s114_s22 = scalar_lea.vmem %s77_s21, 256  ;;  %s118_s23 = scalar_lea.vmem %s77_s21, 1024 }
  0x26   :  { %p115_p8 = scmp.ne.s32.totalorder %s77_s21, %s114_s22  ;;  %p119_p9 = scmp.lt.s32.totalorder %s77_s21, %s77_s21 }
  0x27   :  { %p120_p10 = scmp.lt.s32.totalorder %s118_s23, %s114_s22 }
  0x29   :  { %p121_p11 = por %p120_p10, %p119_p9 }
  0x2b   :  { %p122_p12 = pnand %p121_p11, %p115_p8 }
  0x2d   :  { %125 = shalt.err (!%p122_p12)
}
  0x2e   :  { %s126_s26 = scalar_lea.hbm %s185_s1, 256 }
  0x2f   :  { %p127_p13 = scmp.ne.s32.totalorder %s185_s1, %s126_s26  ;;  %p130_p0 = scmp.lt.u32.totalorder %s126_s26, %s185_s1 }
  0x31   :  { %p132_p1 = pnand %p130_p0, %p127_p13 }
  0x33   :  { %135 = shalt.err (!%p132_p1)
}
  0x34   :  { %82 = dma.vmem_to_hbm [thread:$0]  %s77_s21, 256, %s185_s1, [#allocation4], %s141_s17, %s141_s17, %s142_s18  }
  0x35   :  { %138 = dma.done.wait [#allocation4], 1024  }
  0x36   :  { %139 = vsyncadd [#allocation4], 4294966272 }
  0x37   :  { %86 = vsyncpa [#allocation3], 1 }
  0x38   :  { %87 = vsyncpa [#allocation4], 1 }

</bundles_post_ra>
